<compile_context>
chip_gen: v7x
topology: tpu7x:2x2x1
jax: 0.10.0
libtpu: 0.0.40
codegen_flags: <defaults>
</compile_context>

<pallas_src>
import jax
import jax.numpy as jnp
from jax.experimental import pallas as pl
from jax.experimental.pallas import tpu as pltpu

# ----------------------------- problem sizes --------------------------------
B = 16       # batch
D_IN = 32    # input_dim
D_OUT = 4    # output_dim
TB = 8       # batch tile (rows per grid step; multiple of 8 sublanes)


def gating_kernel(x_ref, w_ref, b_ref, o_ref):
    # Single MXU dot + EUP tanh; everything lives untiled in VMEM for this block.
    h = jnp.dot(x_ref[...], w_ref[...], preferred_element_type=jnp.float32) + b_ref[...]
    o_ref[...] = jnp.tanh(h).astype(o_ref.dtype)


def gating_forward(x, weight, bias):
    """GatingNetwork forward.  weight is PyTorch-layout [out, in], bias is [out]."""
    batch, d_in = x.shape
    d_out, _ = weight.shape

    # Host-side layout prep (cheap, outside the kernel): transpose to [in, out] so the
    # kernel does a plain x @ W, and give the bias a broadcastable (1, out) shape.
    w_t = jnp.asarray(weight, jnp.float32).T            # [d_in, d_out]
    b2 = jnp.asarray(bias, jnp.float32).reshape(1, d_out)

    tb = TB if batch % TB == 0 else batch               # fall back to one block if tiny
    grid = (pl.cdiv(batch, tb),)

    out = pl.pallas_call(
        gating_kernel,
        out_shape=jax.ShapeDtypeStruct((batch, d_out), jnp.float32),
        grid=grid,
        in_specs=[
            pl.BlockSpec((tb, d_in), lambda i: (i, 0)),     # x: tiled over batch
            pl.BlockSpec((d_in, d_out), lambda i: (0, 0)),  # W: resident across steps
            pl.BlockSpec((1, d_out), lambda i: (0, 0)),     # b: resident across steps
        ],
        out_specs=pl.BlockSpec((tb, d_out), lambda i: (i, 0)),
        compiler_params=pltpu.CompilerParams(
            dimension_semantics=("parallel",),               # v7x: shard across both TCs
        ),
    )(jnp.asarray(x, jnp.float32), w_t, b2)
    return out


if __name__ == "__main__":
    key = jax.random.PRNGKey(0)
    k_x, k_w, k_b = jax.random.split(key, 3)

    x = jax.random.normal(k_x, (B, D_IN), jnp.float32)
    # PyTorch nn.Linear layout: weight [out, in], bias [out]
    weight = 0.2 * jax.random.normal(k_w, (D_OUT, D_IN), jnp.float32)
    bias = 0.2 * jax.random.normal(k_b, (D_OUT,), jnp.float32)

    out = gating_forward(x, weight, bias)
    out = jax.block_until_ready(out)

    # Pure-JAX reference check: y = tanh(x @ W.T + b)
    ref = jnp.tanh(x @ weight.T + bias[None, :])
    assert out.shape == (B, D_OUT)
    assert jnp.all(jnp.isfinite(out))
    assert jnp.allclose(out, ref, atol=1e-5, rtol=1e-5)

    print("KERNEL_OK")
</pallas_src>

<mosaic_0001>
module attributes {stable_mosaic.version = 11 : i64} {
  func.func @gating_kernel(%arg0: i32, %arg1: memref<8x32xf32, #tpu.memory_space<vmem>>, %arg2: memref<32x4xf32, #tpu.memory_space<vmem>>, %arg3: memref<1x4xf32, #tpu.memory_space<vmem>>, %arg4: memref<8x4xf32, #tpu.memory_space<vmem>>) attributes {dimension_semantics = [#tpu.dimension_semantics<parallel>], iteration_bounds = array<i64: 2>, scalar_prefetch = 0 : i64, scratch_operands = 0 : i64, tpu.core_type = #tpu.core_type<tc>, window_params = [{transform_indices = @transform_0, window_bounds = array<i64: 8, 32>}, {pipeline_mode = #tpu.pipeline_mode<synchronous>, transform_indices = @transform_1, window_bounds = array<i64: 32, 4>}, {pipeline_mode = #tpu.pipeline_mode<synchronous>, transform_indices = @transform_2, window_bounds = array<i64: 1, 4>}, {transform_indices = @transform_3, window_bounds = array<i64: 8, 4>}]} {
    %c0 = arith.constant 0 : index
    %c0_0 = arith.constant 0 : index
    %0 = vector.load %arg1[%c0, %c0_0] : memref<8x32xf32, #tpu.memory_space<vmem>>, vector<8x32xf32>
    %c0_1 = arith.constant 0 : index
    %c0_2 = arith.constant 0 : index
    %1 = vector.load %arg2[%c0_1, %c0_2] : memref<32x4xf32, #tpu.memory_space<vmem>>, vector<32x4xf32>
    %cst = arith.constant dense<0.000000e+00> : vector<8x4xf32>
    %2 = tpu.matmul %0, %1, %cst {dimension_numbers = #tpu.dot_dimension_numbers<[1], [0], [0], [1], [0, 0, 1, 1], [], []>} : vector<8x32xf32>, vector<32x4xf32>, vector<8x4xf32> -> vector<8x4xf32>
    %c0_3 = arith.constant 0 : index
    %c0_4 = arith.constant 0 : index
    %3 = vector.load %arg3[%c0_3, %c0_4] : memref<1x4xf32, #tpu.memory_space<vmem>>, vector<1x4xf32>
    %4 = vector.broadcast %3 : vector<1x4xf32> to vector<8x4xf32>
    %5 = arith.addf %2, %4 : vector<8x4xf32>
    %6 = math.tanh %5 : vector<8x4xf32>
    %c0_5 = arith.constant 0 : index
    %c0_6 = arith.constant 0 : index
    %7 = vector.load %arg4[%c0_5, %c0_6] : memref<8x4xf32, #tpu.memory_space<vmem>>, vector<8x4xf32>
    tpu.vector_store %arg4[%c0_5, %c0_6], %6 {strides = array<i32>} : memref<8x4xf32, #tpu.memory_space<vmem>>, vector<8x4xf32>,
    return
  }
  func.func @transform_0(%arg0: i32) -> (i32, i32) {
    %c0_i32 = arith.constant 0 : i32
    %c0_i32_0 = arith.constant 0 : i32
    return %arg0, %c0_i32 : i32, i32
  }
  func.func @transform_1(%arg0: i32) -> (i32, i32) {
    %c0_i32 = arith.constant 0 : i32
    %c0_i32_0 = arith.constant 0 : i32
    %c0_i32_1 = arith.constant 0 : i32
    return %c0_i32, %c0_i32_0 : i32, i32
  }
  func.func @transform_2(%arg0: i32) -> (i32, i32) {
    %c0_i32 = arith.constant 0 : i32
    %c0_i32_0 = arith.constant 0 : i32
    %c0_i32_1 = arith.constant 0 : i32
    return %c0_i32, %c0_i32_0 : i32, i32
  }
  func.func @transform_3(%arg0: i32) -> (i32, i32) {
    %c0_i32 = arith.constant 0 : i32
    %c0_i32_0 = arith.constant 0 : i32
    return %arg0, %c0_i32 : i32, i32
  }
}

</mosaic_0001>

<bundles_post_ra>
// kernel: tpu_custom_call.1
= control target key start
LH: loop header
LB: loop body
LE: loop exit
PB: predicated region body
PF: predicated region fallthrough
CT: control target
= control target key end

     0   :  { %s385_s12 = smov 0   ;;  %s417_s0 = inlined_call_operand.vmem [shape: f32[16,32], index: 0, kind: input, shape index: {}]   ;;  %s418_s1 = inlined_call_operand.vmem [shape: f32[32,4], index: 1, kind: input, shape index: {}]   ;;  %s419_s2 = inlined_call_operand.vmem [shape: f32[1,4], index: 2, kind: input, shape index: {}]   ;;  %s420_s3 = inlined_call_operand.vmem [shape: f32[16,4], index: 3, kind: output, shape index: {}]  }
   0x1 LB: > { %s308_s13 = sadd.s32 4294967295, %s360_s12   ;;  %p312_p0 = scmp.ge.s32.totalorder %s360_s12, 1  ;;  %s360_s12 = sphi %s385_s12, %s13_s12  }
   0x2   : > { %p136_p1 = scmp.lt.s32.totalorder %s360_s12, 3 }
   0x4   : > { %p137_p2 = pnand %p312_p0, %p136_p1 }
   0x5   : > { %v167_v0 = vld [vmem:[%s418_s1] sm:$0xff] (!%p137_p2)  ;;  %v168_v1 = vld [vmem:[%s418_s1 + $0x8] sm:$0xff] (!%p137_p2)  ;;  %v169_v2 = vld [vmem:[%s418_s1 + $0x10] sm:$0xff] (!%p137_p2)  ;;  %v362_v3 = vmov (!%p137_p2), 0.0|0.0   ;;  %vm363_vm0 = vmmov (!%p137_p2), 0   ;;  %v364_v6 = vmov (!%p137_p2), 0.0  }
   0x6   : > { %140 = sbr.rel (%p137_p2) target bundleno = 243 (0xf3), region = 32  ;;  %335 = vmatprep.subr.bf16.mxu0 (!%p137_p2), %v362_v3  ;;  %v336_v4 = vpack.c.bf16 (!%p137_p2), %v168_v1, %v167_v0  ;;  %v170_v5 = vld [vmem:[%s418_s1 + $0x18] sm:$0xff] (!%p137_p2)  ;;  %332 = vmatprep.mubr.msk.f32.mxu0 (!%p137_p2), %vm363_vm0, %v364_v6  ;;  %p158_p3 = scmp.lt.s32.totalorder (!%p137_p2), %s308_s13, 1  ;;  %vm178_vm1 = vcmask (!%p137_p2), 261120   ;;  %v315_v9 = vld [vmem:[%s419_s2] ss:$0 sm:$0xff] (!%p137_p2) }
   0x7   : > { %v339_v7 = vpack.c.bf16 (!%p137_p2), %v170_v5, %v169_v2  ;;  %vm253_vm2 = vcmask (!%p137_p2), 31744  }
   0x8   : > { %337 = vmatpush3.bf16.msra.mxu0 (!%p137_p2), %v336_v4 }
   0x9   : > { %338 = vmatprep.subr.bf16.mxu0 (!%p137_p2), %v362_v3 }
   0xc   : > { %340 = vmatpush3.bf16.msra.mxu0 (!%p137_p2), %v339_v7 }
   0xd   : > { %s422_s13 = smov (!%p158_p3, %s308_s13), 1 }
   0xe   : > { %s313_s22 = sshll.u32 %s422_s13, 3 }
   0xf   : > { %s161_s25 = scalar_lea.vmem %s417_s0, %s313_s22  ;;  %s165_s30 = scalar_lea.vmem %s420_s3, %s313_s22 }
  0x10   : > { %v166_v8 = vld [vmem:[%s161_s25] sm:$0xff] }
  0x11   : > { %333 = vmatmul.mubr.msk.f32.vlgmr.msra.gmra.mrb[0].mxu0 %vm178_vm1, %v166_v8 }
  0xe4   : > { %v248_v10 = vpop.f32.mrb[0].mxu0 }
  0xe5   : > { %v249_v11 = vadd.f32 %v315_v9, %v248_v10  ;;  %v334_v12 = vpop.f32.mrb[1].mxu0 }
  0xe7   : > { %352 = vtanh.f32 %v249_v11 }
  0xf1   : > { %v353_v13 = vpop.eup %352 }
  0xf2   : > { %254 = vst.msk [vmem:[%s165_s30] sm:$0xff] %vm253_vm2, %v353_v13 }
  0xf3 PF: > { %s13_s12 = sadd.s32 1, %s360_s12  }
  0xf4   : > { %p10_p4 = scmp.ge.s32.totalorder %s13_s12, 4  }
  0xf6   :  { %12 = sbr.rel (!%p10_p4) target bundleno = 1 (0x1), region = 62 }

</bundles_post_ra>
